<compile_context>
chip_gen: v5e
topology: v5e:2x2
jax: 0.10.0
libtpu: 0.0.40
codegen_flags: <defaults>
</compile_context>

<pallas_src>
import functools

import jax
import jax.numpy as jnp
from jax import lax
from jax.experimental import pallas as pl
from jax.experimental.pallas import tpu as pltpu


def fuse_params(w0, b0, w1, b1):
    """Fold Linear(32,10) -> Linear(10,1) into one (8,128) weight+bias block (computed once).

    rows 0..3, lanes 32j..32j+31 : fused weight w_eff (replicated block-diagonally so one
                                   K=128 contraction handles 4 batch rows at a time)
    row 4, lane 0                : fused bias b_eff
    """
    w_eff = (w1 @ w0).reshape(32).astype(jnp.float32)        # (32,)
    b_eff = (w1 @ b0 + b1).reshape(()).astype(jnp.float32)   # scalar
    wb = jnp.zeros((8, 128), jnp.float32)
    for j in range(4):
        wb = wb.at[j, 32 * j:32 * (j + 1)].set(w_eff)
    wb = wb.at[4, 0].set(b_eff)
    return wb


def fused_mlp_kernel(x_ref, wb_ref, o_ref):
    # x_ref : (TM4, 128) VMEM tile; each row packs 4 consecutive batch rows (lane-dense view).
    # wb_ref: (8, 128) VMEM; rows 0..3 = fused weight, [4, 0] = fused bias.
    # o_ref : (4, TM4) VMEM; lane-dense output, column r holds batch rows 4r..4r+3.
    y = lax.dot_general(
        wb_ref[0:4, :], x_ref[...],
        dimension_numbers=(((1,), (1,)), ((), ())),   # (4,128) @ (TM4,128)^T -> (4, TM4)
        preferred_element_type=jnp.float32,
    )
    b = wb_ref[4:5, 0:1]                              # (1,1) fused bias, broadcasts
    o_ref[...] = jnp.maximum(y + b, 0.0)


@functools.partial(jax.jit, static_argnames=("tm",))
def mlp_forward(x, wb, *, tm=32768):
    """x: (B, 32) f32. Returns (B, 1) f32 == ReLU(Dense1(Dense0(x)))."""
    B, D = x.shape
    assert D == 32, "model expects 32 input features"

    # Pad only to a multiple of 4 rows (<= 3 junk rows; skipped entirely when B % 4 == 0).
    rem = (-B) % 4
    if rem:
        x = jnp.pad(x, ((0, rem), (0, 0)))
    b4 = (B + rem) // 4
    x4 = x.reshape(b4, 128)          # free row-major merge: 4 batch rows per 128-lane row

    tm4 = max(tm // 4, 8)
    if b4 <= tm4:
        tm4_eff = b4                 # single full-array block (legal for any size)
        grid = (1,)
    else:
        tm4_eff = tm4                # multiple of 8 sublanes; lanes = 128
        grid = (pl.cdiv(b4, tm4_eff),)   # ragged last block handled by Pallas masking

    # v7x: 2 TensorCores share 3.2 TB/s HBM -> shard the batch axis across cores.
    dim_sem = ("parallel",)
    try:
        if "v7" in jax.devices()[0].device_kind.lower() and grid[0] >= 2:
            dim_sem = (pltpu.CORE_PARALLEL,)
    except Exception:
        pass

    cost = pl.CostEstimate(
        flops=2 * 4 * 128 * b4,
        transcendentals=0,
        bytes_accessed=b4 * 128 * 4 + 4 * b4 * 4 + 8 * 128 * 4,
    )

    out = pl.pallas_call(
        fused_mlp_kernel,
        out_shape=jax.ShapeDtypeStruct((4, b4), jnp.float32),
        grid=grid,
        in_specs=[
            pl.BlockSpec((tm4_eff, 128), lambda i: (i, 0)),   # pipelined lane-dense x tiles
            pl.BlockSpec((8, 128), lambda i: (0, 0)),         # fused weight+bias, resident
        ],
        out_specs=pl.BlockSpec((4, tm4_eff), lambda i: (0, i)),  # lane-dense output block
        compiler_params=pltpu.CompilerParams(dimension_semantics=dim_sem),
        cost_estimate=cost,
    )(x4, wb)

    # Tiny (4, B/4) result -> (B, 1); column r holds batch rows 4r..4r+3.
    return out.T.reshape(-1, 1)[:B]


if __name__ == "__main__":
    key = jax.random.PRNGKey(0)
    k_x, k_w0, k_b0, k_w1, k_b1 = jax.random.split(key, 5)

    # Parameters with the same shapes/init ranges as torch.nn.Linear(32,10)/Linear(10,1).
    bound0 = 1.0 / jnp.sqrt(32.0)
    w0 = jax.random.uniform(k_w0, (10, 32), jnp.float32, -bound0, bound0)
    b0 = jax.random.uniform(k_b0, (10,), jnp.float32, -bound0, bound0)
    bound1 = 1.0 / jnp.sqrt(10.0)
    w1 = jax.random.uniform(k_w1, (1, 10), jnp.float32, -bound1, bound1)
    b1 = jax.random.uniform(k_b1, (1,), jnp.float32, -bound1, bound1)

    # One-time parameter fusion (hoisted out of the per-call hot path).
    wb = jax.block_until_ready(fuse_params(w0, b0, w1, b1))

    def ref_forward(xs):
        return jnp.maximum((xs @ w0.T + b0) @ w1.T + b1, 0.0)

    # 1) Small demo batch (single full-array tile, default tm).
    B = 8
    x = jax.random.normal(k_x, (B, 32), dtype=jnp.float32)
    out = jax.block_until_ready(mlp_forward(x, wb))
    assert out.shape == (B, 1)
    assert jnp.allclose(out, ref_forward(x), atol=1e-4, rtol=1e-4)

    # 2) Multi-step grid + ragged last block (tm=1024 -> grid=(3,), no full-tensor pad).
    B2 = 2600
    x2 = jax.random.normal(k_x, (B2, 32), dtype=jnp.float32)
    out2 = jax.block_until_ready(mlp_forward(x2, wb, tm=1024))
    assert out2.shape == (B2, 1)
    assert jnp.allclose(out2, ref_forward(x2), atol=1e-4, rtol=1e-4)

    # 3) Batch not a multiple of 4 (exercises the <=3-row alignment pad path).
    B3 = 2601
    x3 = jax.random.normal(k_x, (B3, 32), dtype=jnp.float32)
    out3 = jax.block_until_ready(mlp_forward(x3, wb, tm=1024))
    assert out3.shape == (B3, 1)
    assert jnp.allclose(out3, ref_forward(x3), atol=1e-4, rtol=1e-4)

    # 4) Large batch with the default tm=32768 (multi-step grid + ragged last block).
    B4 = 70000
    x4 = jax.random.normal(k_x, (B4, 32), dtype=jnp.float32)
    out4 = jax.block_until_ready(mlp_forward(x4, wb))
    assert out4.shape == (B4, 1)
    assert jnp.allclose(out4, ref_forward(x4), atol=1e-4, rtol=1e-4)

    print("KERNEL_OK")
</pallas_src>

<mosaic_0001>
module attributes {stable_mosaic.version = 11 : i64} {
  func.func @fused_mlp_kernel(%arg0: i32, %arg1: memref<2x128xf32, #tpu.memory_space<vmem>>, %arg2: memref<8x128xf32, #tpu.memory_space<vmem>>, %arg3: memref<4x2xf32, #tpu.memory_space<vmem>>) attributes {dimension_semantics = [#tpu.dimension_semantics<parallel>], iteration_bounds = array<i64: 1>, scalar_prefetch = 0 : i64, scratch_operands = 0 : i64, tpu.core_type = #tpu.core_type<tc>, window_params = [{transform_indices = @transform_0, window_bounds = array<i64: 2, 128>}, {pipeline_mode = #tpu.pipeline_mode<synchronous>, transform_indices = @transform_1, window_bounds = array<i64: 8, 128>}, {transform_indices = @transform_2, window_bounds = array<i64: 4, 2>}]} {
    %c0 = arith.constant 0 : index
    %c0_0 = arith.constant 0 : index
    %0 = vector.load %arg2[%c0, %c0_0] : memref<8x128xf32, #tpu.memory_space<vmem>>, vector<4x128xf32>
    %c0_1 = arith.constant 0 : index
    %c0_2 = arith.constant 0 : index
    %1 = vector.load %arg1[%c0_1, %c0_2] : memref<2x128xf32, #tpu.memory_space<vmem>>, vector<2x128xf32>
    %cst = arith.constant dense<0.000000e+00> : vector<4x2xf32>
    %2 = tpu.matmul %0, %1, %cst {dimension_numbers = #tpu.dot_dimension_numbers<[1], [1], [0], [0], [0, 0, 1, 0], [], []>} : vector<4x128xf32>, vector<2x128xf32>, vector<4x2xf32> -> vector<4x2xf32>
    %c4 = arith.constant 4 : index
    %c0_3 = arith.constant 0 : index
    %3 = vector.load %arg2[%c4, %c0_3] : memref<8x128xf32, #tpu.memory_space<vmem>>, vector<1x1xf32>
    %4 = vector.broadcast %3 : vector<1x1xf32> to vector<4x2xf32>
    %5 = arith.addf %2, %4 : vector<4x2xf32>
    %cst_4 = arith.constant 0.000000e+00 : f32
    %6 = vector.broadcast %cst_4 : f32 to vector<4x2xf32>
    %7 = arith.maximumf %5, %6 : vector<4x2xf32>
    %c0_5 = arith.constant 0 : index
    %c0_6 = arith.constant 0 : index
    %8 = vector.load %arg3[%c0_5, %c0_6] : memref<4x2xf32, #tpu.memory_space<vmem>>, vector<4x2xf32>
    tpu.vector_store %arg3[%c0_5, %c0_6], %7 {strides = array<i32>} : memref<4x2xf32, #tpu.memory_space<vmem>>, vector<4x2xf32>,
    return
  }
  func.func @transform_0(%arg0: i32) -> (i32, i32) {
    %c0_i32 = arith.constant 0 : i32
    %c0_i32_0 = arith.constant 0 : i32
    return %arg0, %c0_i32 : i32, i32
  }
  func.func @transform_1(%arg0: i32) -> (i32, i32) {
    %c0_i32 = arith.constant 0 : i32
    %c0_i32_0 = arith.constant 0 : i32
    %c0_i32_1 = arith.constant 0 : i32
    return %c0_i32, %c0_i32_0 : i32, i32
  }
  func.func @transform_2(%arg0: i32) -> (i32, i32) {
    %c0_i32 = arith.constant 0 : i32
    %c0_i32_0 = arith.constant 0 : i32
    return %c0_i32, %arg0 : i32, i32
  }
}

</mosaic_0001>

<bundles_post_ra>
// kernel: mlp_forward.1
= control target key start
LH: loop header
LB: loop body
LE: loop exit
PB: predicated region body
PF: predicated region fallthrough
CT: control target
= control target key end

     0   :  { %vm39_vm0 = vcmask 11264   ;;  %s74_s0 = inlined_call_operand.vmem [shape: f32[2,128], index: 0, kind: input, shape index: {}]   ;;  %s75_s1 = inlined_call_operand.vmem [shape: f32[8,128], index: 1, kind: input, shape index: {}]   ;;  %s76_s2 = inlined_call_operand.vmem [shape: f32[4,2], index: 2, kind: output, shape index: {}]  }
   0x1   :  { %v12_v0 = vld [vmem:[%s74_s0] sm:$0x3]  ;;  %v13_v1 = vld [vmem:[%s75_s1 + $0x4] sm:$0x1] }
   0x2   :  { %33 = vmatpush.xpose.msra.mxu0 %v12_v0  ;;  %v11_v2 = vld [vmem:[%s75_s1] sm:$0xf]  ;;  %45 = vpush %v13_v1 }
   0x5   :  { %34 = vmatmul.f32.vlgmr.msra.gmra.mxu0 %v11_v2 }
  0x33   :  { %s46_s15 = spop %45 }
  0x34   :  { %v16_v3 = vstv %s46_s15 }
  0x82   :  { %v35_v4 = vpop.f32.mrf.mxu0 }
  0x83   :  { %v36_v5 = vadd.f32 %v35_v4, %v16_v3 }
  0x85   :  { %v38_v6 = vmax.f32 %v36_v5, 0.0 }
  0x87   :  { %40 = vst.msk [vmem:[%s76_s2] sm:$0xf] %vm39_vm0, %v38_v6 }

</bundles_post_ra>
